<compile_context>
chip_gen: v6e
topology: v6e:2x2x1
jax: 0.10.0
libtpu: 0.0.40
codegen_flags: <defaults>
</compile_context>

<pallas_src>
import jax
import jax.numpy as jnp
from jax import lax
from jax.experimental import pallas as pl
from jax.experimental.pallas import tpu as pltpu


_MIN_TM = 8
_TARGET_TM = 4096               # 2048-4096 rows amortize the ~0.35us per-step cost
_MODEST_TM = 256                # smallest batch tile we try to preserve when K-tiling
_SINGLE_BUF_W_BYTES = 8 << 20   # single-buffer the resident weight above this size
_VMEM_SLACK = 512 * 1024        # bias + misc headroom in the footprint estimate


def _vmem_capacity_bytes():
    """Per-core VMEM capacity (generation-aware), with a v7x-safe fallback."""
    try:
        cap = getattr(pltpu.get_tpu_info(), "vmem_capacity_bytes", None)
        if cap:
            return int(cap)
    except Exception:
        pass
    return 64 * 1024 * 1024


def _round8_down(n):
    return max(_MIN_TM, (n // 8) * 8)


def _fused_kernel(x_ref, w_ref, b_ref, o_ref):
    # x_ref: (TM, K) stream dtype; w_ref: (K, N) stream dtype (pre-transposed in
    # the wrapper -> natural MXU layout); b_ref: (1, N) f32; o_ref: (TM, N).
    acc = jnp.dot(x_ref[...], w_ref[...], preferred_element_type=jnp.float32)
    o_ref[...] = jnp.tanh(acc + b_ref[...]).astype(o_ref.dtype)


def _ktiled_kernel(x_ref, w_ref, b_ref, o_ref, acc_ref):
    # K-tiled variant: f32 accumulator scratch, init at k==0, bias+tanh at k==last.
    @pl.when(pl.program_id(1) == 0)
    def _():
        acc_ref[...] = jnp.zeros_like(acc_ref)

    acc_ref[...] += jnp.dot(x_ref[...], w_ref[...],
                            preferred_element_type=jnp.float32)

    @pl.when(pl.program_id(1) == pl.num_programs(1) - 1)
    def _():
        o_ref[...] = jnp.tanh(acc_ref[...] + b_ref[...]).astype(o_ref.dtype)


def interact_attention(x, weight, bias, *, tm=None, tk=None,
                       stream_dtype=None, force_pallas=False):
    """tanh(x @ weight.T + bias).

    x:      (B, num_tasks*dim)
    weight: (dim, num_tasks*dim)   (PyTorch nn.Linear layout)
    bias:   (dim,)
    stream_dtype: dtype used to stream x/weight through HBM->VMEM (e.g. bf16);
                  accumulation / bias / tanh are always f32.  None = keep x.dtype.
    """
    B, in_features = x.shape
    out_features = weight.shape[0]
    assert weight.shape == (out_features, in_features)
    assert bias.shape == (out_features,)
    out_dtype = x.dtype

    # ---- tiny-shape fast path ---------------------------------------------
    # At a few hundred KB the pallas_call launch + per-step overhead guarantees a
    # regression vs a fused XLA tanh(x @ W.T + b).
    in_item = jnp.dtype(x.dtype).itemsize
    prob_bytes = (x.size + weight.size + B * out_features) * in_item
    if not force_pallas and prob_bytes <= (1 << 20):
        y = lax.dot_general(x, weight, dimension_numbers=(((1,), (1,)), ((), ())),
                            precision=lax.Precision.HIGHEST)
        return jnp.tanh(y + bias.astype(y.dtype)).astype(out_dtype)

    # ---- operand staging ----------------------------------------------------
    sdt = jnp.dtype(stream_dtype) if stream_dtype is not None else jnp.dtype(x.dtype)
    x_s = x.astype(sdt)
    # One O(out*in) relayout per call; avoids any per-grid-step weight transpose.
    w_t = weight.astype(sdt).T                           # (in_features, out_features)
    b2 = bias.astype(jnp.float32).reshape(1, out_features)

    x_item = sdt.itemsize
    w_item = sdt.itemsize
    o_item = jnp.dtype(out_dtype).itemsize

    # Generation-aware VMEM budget (~75% of per-core capacity).
    vmem_cap = _vmem_capacity_bytes()
    budget = (vmem_cap * 3) // 4

    # ---- choose the K (reduction) tile --------------------------------------
    if tk is None:
        cands = [c for c in (in_features, 4096, 2048, 1024, 512, 256, 128)
                 if c <= in_features and in_features % c == 0
                 and (c == in_features or c % 128 == 0)]
        tk = cands[-1]
        for cand in cands:
            w_bufs_c = 1 if (cand == in_features and
                             cand * out_features * w_item >= _SINGLE_BUF_W_BYTES) else 2
            fixed_c = w_bufs_c * cand * out_features * w_item + _VMEM_SLACK
            per_row_c = (2 * cand * x_item + 2 * out_features * o_item
                         + (out_features * 4 if cand != in_features else 0))
            if fixed_c + _MODEST_TM * per_row_c <= budget:
                tk = cand
                break
    else:
        assert in_features % tk == 0 and (tk == in_features or tk % 128 == 0), (
            "tk must divide in_features and be a multiple of 128")

    gk = in_features // tk
    full_k = gk == 1

    # Grid-invariant resident weight needs no "next" prefetch buffer: single-buffer
    # it (halves its VMEM footprint) once it is big enough to matter.
    w_tile_bytes = tk * out_features * w_item
    single_buffer_w = full_k and w_tile_bytes >= _SINGLE_BUF_W_BYTES
    w_bufs = 1 if single_buffer_w else 2

    # ---- choose the batch tile from the VMEM budget -------------------------
    fixed = w_bufs * w_tile_bytes + _VMEM_SLACK
    per_row = (2 * tk * x_item                          # x tile, double buffered
               + 2 * out_features * o_item              # out tile, double buffered
               + (out_features * 4 if gk > 1 else 0))   # f32 accumulator scratch
    tm_cap = max(_MIN_TM, (budget - fixed) // per_row)
    if tm is None:
        tm = _TARGET_TM
    tm = min(tm, tm_cap)
    # Keep >= 2 batch steps for large B so the "parallel" axis can shard across
    # v7x's two TensorCores (harmless single-TC pipelining on v5e/v6e).
    if B >= 1024:
        tm = min(tm, ((B + 1) // 2 + 7) // 8 * 8)
    if tm >= B:
        tm = B
    else:
        tm = _round8_down(tm)

    gm = pl.cdiv(B, tm)
    grid = (gm, gk)

    # Never clamp the limit below the real footprint; the tile sizing above keeps
    # it under ~75% of this generation's per-core capacity.
    # TODO(synk): if the weight alone exceeded the budget even at tk=128, an N
    # (out_features) tiling axis would be needed; out_features == dim is tiny here.
    vmem_need = fixed + tm * per_row
    vmem_limit = int(min(vmem_cap, max(vmem_need + (4 << 20), 32 << 20)))

    cost = pl.CostEstimate(
        flops=2 * B * in_features * out_features,
        transcendentals=B * out_features,               # tanh
        bytes_accessed=(x_s.size * x_item + w_t.size * w_item
                        + b2.size * 4 + B * out_features * o_item),
    )

    x_spec = pl.BlockSpec((tm, tk), lambda i, k: (i, k))
    if single_buffer_w:
        w_spec = pl.BlockSpec((tk, out_features), lambda i, k: (k, 0),
                              pipeline_mode=pl.Buffered(1))
    else:
        w_spec = pl.BlockSpec((tk, out_features), lambda i, k: (k, 0))
    b_spec = pl.BlockSpec((1, out_features), lambda i, k: (0, 0))
    o_spec = pl.BlockSpec((tm, out_features), lambda i, k: (i, 0))

    if gk == 1:
        kernel = _fused_kernel
        scratch_shapes = []
    else:
        kernel = _ktiled_kernel
        scratch_shapes = [pltpu.VMEM((tm, out_features), jnp.float32)]

    return pl.pallas_call(
        kernel,
        out_shape=jax.ShapeDtypeStruct((B, out_features), out_dtype),
        grid_spec=pltpu.PrefetchScalarGridSpec(
            num_scalar_prefetch=0,
            grid=grid,
            in_specs=[x_spec, w_spec, b_spec],
            out_specs=o_spec,
            scratch_shapes=scratch_shapes,
        ),
        compiler_params=pltpu.CompilerParams(
            dimension_semantics=("parallel", "arbitrary"),
            vmem_limit_bytes=vmem_limit,
        ),
        cost_estimate=cost,
    )(x_s, w_t, b2)


if __name__ == "__main__":
    key = jax.random.PRNGKey(0)

    def make_problem(dim, num_tasks, batch, k):
        in_features = num_tasks * dim
        kx, kw, kb = jax.random.split(k, 3)
        bound = 1.0 / (in_features ** 0.5)        # PyTorch Linear-style init bound
        weight = jax.random.uniform(kw, (dim, in_features), jnp.float32, -bound, bound)
        bias = jax.random.uniform(kb, (dim,), jnp.float32, -bound, bound)
        x = jax.random.normal(kx, (batch, in_features), jnp.float32)
        return x, weight, bias

    def ref_fwd(x, w, b):
        y = lax.dot_general(x.astype(jnp.float32), w.astype(jnp.float32),
                            dimension_numbers=(((1,), (1,)), ((), ())),
                            precision=lax.Precision.HIGHEST)
        return jnp.tanh(y + b.astype(jnp.float32))

    # 1) Module-native small shapes (dim=32, num_tasks=4, B=256), forced through
    #    the Pallas path (single batch tile, full-K fused kernel).
    x, w, b = make_problem(32, 4, 256, jax.random.fold_in(key, 0))
    out = jax.block_until_ready(interact_attention(x, w, b, force_pallas=True))
    assert out.shape == (256, 32)
    assert jnp.allclose(out, ref_fwd(x, w, b), atol=1e-5, rtol=1e-5), "pallas f32 mismatch"

    # 2) Same shapes via the tiny-shape XLA fast path.
    out_fast = jax.block_until_ready(interact_attention(x, w, b))
    assert jnp.allclose(out_fast, ref_fwd(x, w, b), atol=1e-5, rtol=1e-5), "fast path mismatch"

    # 3) Larger batch: auto-selected tm gives a 2-step "parallel" batch grid; under jit.
    x3, w3, b3 = make_problem(32, 4, 2048, jax.random.fold_in(key, 1))
    fwd3 = jax.jit(interact_attention)
    out3 = jax.block_until_ready(fwd3(x3, w3, b3))
    assert jnp.allclose(out3, ref_fwd(x3, w3, b3), atol=1e-5, rtol=1e-5), "batch-tiled mismatch"

    # 4) K-tiled reduction path (in_features=512 split as tk=256 -> 2 K steps,
    #    f32 accumulator + pl.when init/finalize).
    x4, w4, b4 = make_problem(64, 8, 512, jax.random.fold_in(key, 2))
    out4 = jax.block_until_ready(interact_attention(x4, w4, b4, tk=256, force_pallas=True))
    assert jnp.allclose(out4, ref_fwd(x4, w4, b4), atol=2e-5, rtol=2e-5), "k-tiled mismatch"

    # 5) bf16 streaming of x / weight with f32 accumulation + f32 epilogue.
    out5 = jax.block_until_ready(
        interact_attention(x3, w3, b3, stream_dtype=jnp.bfloat16, force_pallas=True))
    xb = x3.astype(jnp.bfloat16).astype(jnp.float32)
    wb = w3.astype(jnp.bfloat16).astype(jnp.float32)
    assert jnp.allclose(out5, ref_fwd(xb, wb, b3), atol=2e-4, rtol=2e-4), "bf16 stream mismatch"

    print("KERNEL_OK")
</pallas_src>

<mosaic_0001>
module attributes {stable_mosaic.version = 11 : i64} {
  func.func @_fused_kernel(%arg0: i32, %arg1: i32, %arg2: memref<256x128xf32, #tpu.memory_space<vmem>>, %arg3: memref<128x32xf32, #tpu.memory_space<vmem>>, %arg4: memref<1x32xf32, #tpu.memory_space<vmem>>, %arg5: memref<256x32xf32, #tpu.memory_space<vmem>>) attributes {dimension_semantics = [#tpu.dimension_semantics<parallel>, #tpu.dimension_semantics<arbitrary>], iteration_bounds = array<i64: 1, 1>, scalar_prefetch = 0 : i64, scratch_operands = 0 : i64, tpu.core_type = #tpu.core_type<tc>, window_params = [{transform_indices = @transform_0, window_bounds = array<i64: 256, 128>}, {transform_indices = @transform_1, window_bounds = array<i64: 128, 32>}, {pipeline_mode = #tpu.pipeline_mode<synchronous>, transform_indices = @transform_2, window_bounds = array<i64: 1, 32>}, {transform_indices = @transform_3, window_bounds = array<i64: 256, 32>}]} {
    %c0 = arith.constant 0 : index
    %c0_0 = arith.constant 0 : index
    %0 = vector.load %arg2[%c0, %c0_0] : memref<256x128xf32, #tpu.memory_space<vmem>>, vector<256x128xf32>
    %c0_1 = arith.constant 0 : index
    %c0_2 = arith.constant 0 : index
    %1 = vector.load %arg3[%c0_1, %c0_2] : memref<128x32xf32, #tpu.memory_space<vmem>>, vector<128x32xf32>
    %cst = arith.constant dense<0.000000e+00> : vector<256x32xf32>
    %2 = tpu.matmul %0, %1, %cst {dimension_numbers = #tpu.dot_dimension_numbers<[1], [0], [0], [1], [0, 0, 1, 1], [], []>} : vector<256x128xf32>, vector<128x32xf32>, vector<256x32xf32> -> vector<256x32xf32>
    %c0_3 = arith.constant 0 : index
    %c0_4 = arith.constant 0 : index
    %3 = vector.load %arg4[%c0_3, %c0_4] : memref<1x32xf32, #tpu.memory_space<vmem>>, vector<1x32xf32>
    %4 = vector.broadcast %3 : vector<1x32xf32> to vector<256x32xf32>
    %5 = arith.addf %2, %4 : vector<256x32xf32>
    %6 = math.tanh %5 : vector<256x32xf32>
    %c0_5 = arith.constant 0 : index
    %c0_6 = arith.constant 0 : index
    %7 = vector.load %arg5[%c0_5, %c0_6] : memref<256x32xf32, #tpu.memory_space<vmem>>, vector<256x32xf32>
    tpu.vector_store %arg5[%c0_5, %c0_6], %6 {strides = array<i32>} : memref<256x32xf32, #tpu.memory_space<vmem>>, vector<256x32xf32>,
    return
  }
  func.func @transform_0(%arg0: i32, %arg1: i32) -> (i32, i32) {
    %c0_i32 = arith.constant 0 : i32
    return %arg0, %arg1 : i32, i32
  }
  func.func @transform_1(%arg0: i32, %arg1: i32) -> (i32, i32) {
    %c0_i32 = arith.constant 0 : i32
    %c0_i32_0 = arith.constant 0 : i32
    return %arg1, %c0_i32 : i32, i32
  }
  func.func @transform_2(%arg0: i32, %arg1: i32) -> (i32, i32) {
    %c0_i32 = arith.constant 0 : i32
    %c0_i32_0 = arith.constant 0 : i32
    %c0_i32_1 = arith.constant 0 : i32
    return %c0_i32, %c0_i32_0 : i32, i32
  }
  func.func @transform_3(%arg0: i32, %arg1: i32) -> (i32, i32) {
    %c0_i32 = arith.constant 0 : i32
    %c0_i32_0 = arith.constant 0 : i32
    return %arg0, %c0_i32 : i32, i32
  }
}

</mosaic_0001>

<bundles_post_ra>
// kernel: tpu_custom_call.1
= control target key start
LH: loop header
LB: loop body
LE: loop exit
PB: predicated region body
PF: predicated region fallthrough
CT: control target
= control target key end

     0   :  { %8 = vsyncpa [#allocation3], 0  ;;  %s628_s12 = smov [#allocation2]   ;;  %s867_s0 = inlined_call_operand.hbm [shape: f32[256,128], index: 0, kind: input, shape index: {}]   ;;  %s868_s1 = inlined_call_operand.vmem [shape: f32[128,32], index: 1, kind: input, shape index: {}]   ;;  %s869_s2 = inlined_call_operand.vmem [shape: f32[1,32], index: 2, kind: input, shape index: {}]   ;;  %s870_s3 = inlined_call_operand.vmem [shape: f32[256,32], index: 3, kind: output, shape index: {}]  }
   0x1   :  { %s14_s13 = sshll.u32 %s628_s12, 4  ;;  %s15_s13 = int_to_ptr.vmem [resolvable:$true] %s14_s13 }
   0x2   :  { %s614_s14 = scalar_lea.vmem %s15_s13, 4096  ;;  %p619_p1 = scmp.lt.s32.totalorder %s15_s13, %s15_s13 }
   0x3   :  { %p615_p0 = scmp.ne.s32.totalorder %s15_s13, %s614_s14  ;;  %p620_p2 = scmp.lt.s32.totalorder %s614_s14, %s614_s14 }
   0x5   :  { %p621_p3 = por %p620_p2, %p619_p1 }
   0x7   :  { %p622_p4 = pnand %p621_p3, %p615_p0 }
   0x9   :  { %625 = shalt.err (!%p622_p4)
}
   0xa   :  { %s629_s15 = smov 128   ;;  %s630_s16 = smov 8  }
   0xb   :  { %20 = dma.hbm_to_vmem [thread:$0]  %s867_s0, 4096, %s15_s13, [#allocation3], %s629_s15, %s629_s15, %s630_s16  }
   0xc   :  { %626 = dma.done.wait [#allocation3], 4096  }
   0xd   :  { %627 = vsyncadd [#allocation3], 4294963200  ;;  %v75_v0 = vld [vmem:[%s868_s1 + $0x78] sm:$0xff]  ;;  %v74_v1 = vld [vmem:[%s868_s1 + $0x70] sm:$0xff]  ;;  %vm340_vm0 = vcmask 261120  }
   0xe   :  { %427 = vmatprep.subr.mxu0 %v75_v0  ;;  %507 = vmatprep.subr.mxu1 %v75_v0  ;;  %v73_v2 = vld [vmem:[%s868_s1 + $0x68] sm:$0xff]  ;;  %v72_v3 = vld [vmem:[%s868_s1 + $0x60] sm:$0xff]  ;;  %v71_v4 = vld [vmem:[%s868_s1 + $0x58] sm:$0xff] }
   0xf   :  { %428 = vmatpush3.msra.mxu0 %v75_v0  ;;  %523 = vmatpush3.msra.mxu1 %v75_v0  ;;  %v70_v5 = vld [vmem:[%s868_s1 + $0x50] sm:$0xff]  ;;  %v69_v6 = vld [vmem:[%s868_s1 + $0x48] sm:$0xff]  ;;  %v68_v7 = vld [vmem:[%s868_s1 + $0x40] sm:$0xff] }
  0x10   :  { %429 = vmatprep.subr.mxu0 %v74_v1  ;;  %508 = vmatprep.subr.mxu1 %v74_v1  ;;  %v67_v8 = vld [vmem:[%s868_s1 + $0x38] sm:$0xff]  ;;  %v66_v9 = vld [vmem:[%s868_s1 + $0x30] sm:$0xff]  ;;  %v65_v10 = vld [vmem:[%s868_s1 + $0x28] sm:$0xff] }
  0x11   :  { %430 = vmatpush3.msra.mxu0 %v74_v1  ;;  %524 = vmatpush3.msra.mxu1 %v74_v1  ;;  %v64_v11 = vld [vmem:[%s868_s1 + $0x20] sm:$0xff]  ;;  %v63_v12 = vld [vmem:[%s868_s1 + $0x18] sm:$0xff]  ;;  %v62_v13 = vld [vmem:[%s868_s1 + $0x10] sm:$0xff] }
  0x12   :  { %431 = vmatprep.subr.mxu0 %v73_v2  ;;  %509 = vmatprep.subr.mxu1 %v73_v2  ;;  %v61_v14 = vld [vmem:[%s868_s1 + $0x8] sm:$0xff]  ;;  %v60_v15 = vld [vmem:[%s868_s1] sm:$0xff]  ;;  %v30_v20 = vld [vmem:[#allocation2 + $0x10] sm:$0xff] }
  0x13   :  { %432 = vmatpush3.msra.mxu0 %v73_v2  ;;  %525 = vmatpush3.msra.mxu1 %v73_v2  ;;  %v28_v16 = vld [vmem:[#allocation2] sm:$0xff]  ;;  %v29_v18 = vld [vmem:[#allocation2 + $0x8] sm:$0xff]  ;;  %v46_v21 = vld [vmem:[#allocation2 + $0x90] sm:$0xff] }
  0x14   :  { %433 = vmatprep.subr.mxu0 %v72_v3  ;;  %510 = vmatprep.subr.mxu1 %v72_v3  ;;  %v44_v17 = vld [vmem:[#allocation2 + $0x80] sm:$0xff]  ;;  %v45_v19 = vld [vmem:[#allocation2 + $0x88] sm:$0xff]  ;;  %v31_v22 = vld [vmem:[#allocation2 + $0x18] sm:$0xff] }
  0x15   :  { %434 = vmatpush3.msra.mxu0 %v72_v3  ;;  %526 = vmatpush3.msra.mxu1 %v72_v3  ;;  %v47_v23 = vld [vmem:[#allocation2 + $0x98] sm:$0xff]  ;;  %v32_v24 = vld [vmem:[#allocation2 + $0x20] sm:$0xff]  ;;  %v33_v26 = vld [vmem:[#allocation2 + $0x28] sm:$0xff] }
  0x16   :  { %435 = vmatprep.subr.mxu0 %v71_v4  ;;  %511 = vmatprep.subr.mxu1 %v71_v4  ;;  %v48_v25 = vld [vmem:[#allocation2 + $0xa0] sm:$0xff]  ;;  %v49_v27 = vld [vmem:[#allocation2 + $0xa8] sm:$0xff]  ;;  %v34_v28 = vld [vmem:[#allocation2 + $0x30] sm:$0xff] }
  0x17   :  { %436 = vmatpush3.msra.mxu0 %v71_v4  ;;  %527 = vmatpush3.msra.mxu1 %v71_v4  ;;  %v50_v29 = vld [vmem:[#allocation2 + $0xb0] sm:$0xff]  ;;  %v35_v30 = vld [vmem:[#allocation2 + $0x38] sm:$0xff]  ;;  %v36_v32 = vld [vmem:[#allocation2 + $0x40] sm:$0xff] }
  0x18   :  { %437 = vmatprep.subr.mxu0 %v70_v5  ;;  %512 = vmatprep.subr.mxu1 %v70_v5  ;;  %v51_v31 = vld [vmem:[#allocation2 + $0xb8] sm:$0xff]  ;;  %v52_v33 = vld [vmem:[#allocation2 + $0xc0] sm:$0xff]  ;;  %v37_v34 = vld [vmem:[#allocation2 + $0x48] sm:$0xff] }
  0x19   :  { %438 = vmatpush3.msra.mxu0 %v70_v5  ;;  %528 = vmatpush3.msra.mxu1 %v70_v5  ;;  %v53_v35 = vld [vmem:[#allocation2 + $0xc8] sm:$0xff]  ;;  %v38_v36 = vld [vmem:[#allocation2 + $0x50] sm:$0xff]  ;;  %v39_v38 = vld [vmem:[#allocation2 + $0x58] sm:$0xff] }
  0x1a   :  { %439 = vmatprep.subr.mxu0 %v69_v6  ;;  %513 = vmatprep.subr.mxu1 %v69_v6  ;;  %v54_v37 = vld [vmem:[#allocation2 + $0xd0] sm:$0xff]  ;;  %v55_v39 = vld [vmem:[#allocation2 + $0xd8] sm:$0xff]  ;;  %v40_v40 = vld [vmem:[#allocation2 + $0x60] sm:$0xff] }
  0x1b   :  { %440 = vmatpush3.msra.mxu0 %v69_v6  ;;  %529 = vmatpush3.msra.mxu1 %v69_v6  ;;  %v56_v41 = vld [vmem:[#allocation2 + $0xe0] sm:$0xff]  ;;  %v41_v42 = vld [vmem:[#allocation2 + $0x68] sm:$0xff]  ;;  %v42_v44 = vld [vmem:[#allocation2 + $0x70] sm:$0xff] }
  0x1c   :  { %441 = vmatprep.subr.mxu0 %v68_v7  ;;  %514 = vmatprep.subr.mxu1 %v68_v7  ;;  %v57_v43 = vld [vmem:[#allocation2 + $0xe8] sm:$0xff]  ;;  %v58_v45 = vld [vmem:[#allocation2 + $0xf0] sm:$0xff]  ;;  %v43_v46 = vld [vmem:[#allocation2 + $0x78] sm:$0xff] }
  0x1d   :  { %442 = vmatpush3.msra.mxu0 %v68_v7  ;;  %530 = vmatpush3.msra.mxu1 %v68_v7  ;;  %v59_v47 = vld [vmem:[#allocation2 + $0xf8] sm:$0xff]  ;;  %v705_v48 = vld [vmem:[%s869_s2] ss:$0 sm:$0xff] }
  0x1e   :  { %443 = vmatprep.subr.mxu0 %v67_v8  ;;  %515 = vmatprep.subr.mxu1 %v67_v8 }
  0x1f   :  { %444 = vmatpush3.msra.mxu0 %v67_v8  ;;  %531 = vmatpush3.msra.mxu1 %v67_v8 }
  0x20   :  { %445 = vmatprep.subr.mxu0 %v66_v9  ;;  %516 = vmatprep.subr.mxu1 %v66_v9 }
  0x21   :  { %446 = vmatpush3.msra.mxu0 %v66_v9  ;;  %532 = vmatpush3.msra.mxu1 %v66_v9 }
  0x22   :  { %447 = vmatprep.subr.mxu0 %v65_v10  ;;  %517 = vmatprep.subr.mxu1 %v65_v10 }
  0x23   :  { %448 = vmatpush3.msra.mxu0 %v65_v10  ;;  %533 = vmatpush3.msra.mxu1 %v65_v10 }
  0x24   :  { %449 = vmatprep.subr.mxu0 %v64_v11  ;;  %518 = vmatprep.subr.mxu1 %v64_v11 }
  0x25   :  { %450 = vmatpush3.msra.mxu0 %v64_v11  ;;  %534 = vmatpush3.msra.mxu1 %v64_v11 }
  0x26   :  { %451 = vmatprep.subr.mxu0 %v63_v12  ;;  %519 = vmatprep.subr.mxu1 %v63_v12 }
  0x27   :  { %452 = vmatpush3.msra.mxu0 %v63_v12  ;;  %535 = vmatpush3.msra.mxu1 %v63_v12 }
  0x28   :  { %453 = vmatprep.subr.mxu0 %v62_v13  ;;  %520 = vmatprep.subr.mxu1 %v62_v13 }
  0x29   :  { %454 = vmatpush3.msra.mxu0 %v62_v13  ;;  %536 = vmatpush3.msra.mxu1 %v62_v13 }
  0x2a   :  { %455 = vmatprep.subr.mxu0 %v61_v14  ;;  %521 = vmatprep.subr.mxu1 %v61_v14 }
  0x2b   :  { %456 = vmatpush3.msra.mxu0 %v61_v14  ;;  %537 = vmatpush3.msra.mxu1 %v61_v14 }
  0x2c   :  { %457 = vmatprep.subr.mxu0 %v60_v15  ;;  %522 = vmatprep.subr.mxu1 %v60_v15 }
  0x2d   :  { %458 = vmatpush3.msra.mxu0 %v60_v15  ;;  %538 = vmatpush3.msra.mxu1 %v60_v15 }
  0x2e   :  { %459 = vmatprep.mubr.f32.mxu0 %v28_v16  ;;  %483 = vmatprep.mubr.f32.mxu1 %v44_v17 }
  0x2f   :  { %460 = vmatmul.mubr.f32.vlgmr.msra.gmra.mxu0 %v29_v18  ;;  %484 = vmatmul.mubr.f32.vlgmr.msra.gmra.mxu1 %v45_v19 }
  0x30   :  { %462 = vmatprep.mubr.f32.mxu0 %v30_v20  ;;  %486 = vmatprep.mubr.f32.mxu1 %v46_v21 }
  0x33   :  { %463 = vmatmul.mubr.f32.gmra.mxu0 %v31_v22  ;;  %487 = vmatmul.mubr.f32.gmra.mxu1 %v47_v23 }
  0x34   :  { %465 = vmatprep.mubr.f32.mxu0 %v32_v24  ;;  %489 = vmatprep.mubr.f32.mxu1 %v48_v25 }
  0x37   :  { %466 = vmatmul.mubr.f32.gmra.mxu0 %v33_v26  ;;  %490 = vmatmul.mubr.f32.gmra.mxu1 %v49_v27 }
  0x38   :  { %468 = vmatprep.mubr.f32.mxu0 %v34_v28  ;;  %492 = vmatprep.mubr.f32.mxu1 %v50_v29 }
  0x3b   :  { %469 = vmatmul.mubr.f32.gmra.mxu0 %v35_v30  ;;  %493 = vmatmul.mubr.f32.gmra.mxu1 %v51_v31 }
  0x3c   :  { %471 = vmatprep.mubr.f32.mxu0 %v36_v32  ;;  %495 = vmatprep.mubr.f32.mxu1 %v52_v33 }
  0x3f   :  { %472 = vmatmul.mubr.f32.gmra.mxu0 %v37_v34  ;;  %496 = vmatmul.mubr.f32.gmra.mxu1 %v53_v35 }
  0x40   :  { %474 = vmatprep.mubr.f32.mxu0 %v38_v36  ;;  %498 = vmatprep.mubr.f32.mxu1 %v54_v37 }
  0x43   :  { %475 = vmatmul.mubr.f32.gmra.mxu0 %v39_v38  ;;  %499 = vmatmul.mubr.f32.gmra.mxu1 %v55_v39 }
  0x44   :  { %477 = vmatprep.mubr.f32.mxu0 %v40_v40  ;;  %501 = vmatprep.mubr.f32.mxu1 %v56_v41 }
  0x47   :  { %478 = vmatmul.mubr.f32.gmra.mxu0 %v41_v42  ;;  %502 = vmatmul.mubr.f32.gmra.mxu1 %v57_v43 }
  0x48   :  { %480 = vmatprep.mubr.f32.mxu0 %v42_v44  ;;  %504 = vmatprep.mubr.f32.mxu1 %v58_v45 }
  0x4b   :  { %481 = vmatmul.mubr.f32.gmra.mxu0 %v43_v46  ;;  %505 = vmatmul.mubr.f32.gmra.mxu1 %v59_v47 }
  0xef   :  { %v461_v49 = vpop.f32.mrf.mxu0  ;;  %v485_v50 = vpop.f32.mrf.mxu1 }
  0xf0   :  { %v155_v51 = vadd.f32 %v461_v49, %v705_v48  ;;  %v235_v52 = vadd.f32 %v485_v50, %v705_v48 }
  0xf1   :  { %v149_v53 = vpop.f32.mrf.mxu0  ;;  %v229_v54 = vpop.f32.mrf.mxu1 }
  0xf2   :  { %542 = vtanh.f32 %v155_v51  ;;  %v150_v55 = vadd.f32 %v705_v48, %v149_v53  ;;  %v230_v56 = vadd.f32 %v705_v48, %v229_v54 }
  0xf3   :  { %544 = vtanh.f32 %v235_v52  ;;  %v464_v57 = vpop.f32.mrf.mxu0  ;;  %v488_v58 = vpop.f32.mrf.mxu1 }
  0xf4   :  { %546 = vtanh.f32 %v150_v55  ;;  %v165_v59 = vadd.f32 %v464_v57, %v705_v48  ;;  %v245_v60 = vadd.f32 %v488_v58, %v705_v48 }
  0xf5   :  { %548 = vtanh.f32 %v230_v56  ;;  %v159_v61 = vpop.f32.mrf.mxu0  ;;  %v239_v62 = vpop.f32.mrf.mxu1 }
  0xf6   :  { %550 = vtanh.f32 %v165_v59  ;;  %v160_v63 = vadd.f32 %v705_v48, %v159_v61  ;;  %v240_v0 = vadd.f32 %v705_v48, %v239_v62 }
  0xf7   :  { %552 = vtanh.f32 %v245_v60  ;;  %v467_v1 = vpop.f32.mrf.mxu0  ;;  %v491_v2 = vpop.f32.mrf.mxu1 }
  0xf8   :  { %554 = vtanh.f32 %v160_v63  ;;  %v175_v3 = vadd.f32 %v467_v1, %v705_v48  ;;  %v255_v4 = vadd.f32 %v491_v2, %v705_v48 }
  0xf9   :  { %556 = vtanh.f32 %v240_v0  ;;  %v169_v5 = vpop.f32.mrf.mxu0  ;;  %v249_v6 = vpop.f32.mrf.mxu1 }
  0xfa   :  { %558 = vtanh.f32 %v175_v3  ;;  %v170_v7 = vadd.f32 %v705_v48, %v169_v5  ;;  %v250_v8 = vadd.f32 %v705_v48, %v249_v6 }
  0xfb   :  { %560 = vtanh.f32 %v255_v4  ;;  %v470_v9 = vpop.f32.mrf.mxu0  ;;  %v494_v10 = vpop.f32.mrf.mxu1 }
  0xfc   :  { %562 = vtanh.f32 %v170_v7  ;;  %v185_v11 = vadd.f32 %v470_v9, %v705_v48  ;;  %v265_v12 = vadd.f32 %v494_v10, %v705_v48 }
  0xfd   :  { %564 = vtanh.f32 %v250_v8  ;;  %v179_v13 = vpop.f32.mrf.mxu0  ;;  %v259_v14 = vpop.f32.mrf.mxu1 }
  0xfe   :  { %566 = vtanh.f32 %v185_v11  ;;  %v180_v15 = vadd.f32 %v705_v48, %v179_v13  ;;  %v260_v16 = vadd.f32 %v705_v48, %v259_v14 }
  0xff   :  { %v543_v17 = vpop.eup %542  ;;  %568 = vtanh.f32 %v265_v12  ;;  %v473_v18 = vpop.f32.mrf.mxu0 }
 0x100   :  { %v497_v19 = vpop.f32.mrf.mxu1  ;;  %v545_v20 = vpop.eup %544  ;;  %342 = vst.msk [vmem:[%s870_s3 + $0x8] sm:$0xff] %vm340_vm0, %v543_v17  ;;  %570 = vtanh.f32 %v180_v15  ;;  %v195_v21 = vadd.f32 %v473_v18, %v705_v48 }
 0x101   :  { %v275_v22 = vadd.f32 %v497_v19, %v705_v48  ;;  %v547_v23 = vpop.eup %546  ;;  %358 = vst.msk [vmem:[%s870_s3 + $0x88] sm:$0xff] %vm340_vm0, %v545_v20  ;;  %572 = vtanh.f32 %v260_v16  ;;  %v189_v24 = vpop.f32.mrf.mxu0 }
 0x102   :  { %v269_v25 = vpop.f32.mrf.mxu1  ;;  %v549_v26 = vpop.eup %548  ;;  %341 = vst.msk [vmem:[%s870_s3] sm:$0xff] %vm340_vm0, %v547_v23  ;;  %574 = vtanh.f32 %v195_v21  ;;  %v190_v27 = vadd.f32 %v705_v48, %v189_v24 }
 0x103   :  { %v270_v28 = vadd.f32 %v705_v48, %v269_v25  ;;  %v551_v29 = vpop.eup %550  ;;  %357 = vst.msk [vmem:[%s870_s3 + $0x80] sm:$0xff] %vm340_vm0, %v549_v26  ;;  %576 = vtanh.f32 %v275_v22  ;;  %v476_v30 = vpop.f32.mrf.mxu0 }
 0x104   :  { %v500_v31 = vpop.f32.mrf.mxu1  ;;  %v553_v32 = vpop.eup %552  ;;  %344 = vst.msk [vmem:[%s870_s3 + $0x18] sm:$0xff] %vm340_vm0, %v551_v29  ;;  %578 = vtanh.f32 %v190_v27  ;;  %v205_v33 = vadd.f32 %v476_v30, %v705_v48 }
 0x105   :  { %v285_v34 = vadd.f32 %v500_v31, %v705_v48  ;;  %v555_v35 = vpop.eup %554  ;;  %360 = vst.msk [vmem:[%s870_s3 + $0x98] sm:$0xff] %vm340_vm0, %v553_v32  ;;  %580 = vtanh.f32 %v270_v28  ;;  %v199_v36 = vpop.f32.mrf.mxu0 }
 0x106   :  { %v279_v37 = vpop.f32.mrf.mxu1  ;;  %v557_v38 = vpop.eup %556  ;;  %343 = vst.msk [vmem:[%s870_s3 + $0x10] sm:$0xff] %vm340_vm0, %v555_v35  ;;  %582 = vtanh.f32 %v205_v33  ;;  %v200_v39 = vadd.f32 %v705_v48, %v199_v36 }
 0x107   :  { %v280_v40 = vadd.f32 %v705_v48, %v279_v37  ;;  %v559_v41 = vpop.eup %558  ;;  %359 = vst.msk [vmem:[%s870_s3 + $0x90] sm:$0xff] %vm340_vm0, %v557_v38  ;;  %584 = vtanh.f32 %v285_v34  ;;  %v479_v42 = vpop.f32.mrf.mxu0 }
 0x108   :  { %v503_v43 = vpop.f32.mrf.mxu1  ;;  %v561_v44 = vpop.eup %560  ;;  %346 = vst.msk [vmem:[%s870_s3 + $0x28] sm:$0xff] %vm340_vm0, %v559_v41  ;;  %586 = vtanh.f32 %v200_v39  ;;  %v215_v45 = vadd.f32 %v479_v42, %v705_v48 }
 0x109   :  { %v295_v46 = vadd.f32 %v503_v43, %v705_v48  ;;  %v563_v47 = vpop.eup %562  ;;  %362 = vst.msk [vmem:[%s870_s3 + $0xa8] sm:$0xff] %vm340_vm0, %v561_v44  ;;  %588 = vtanh.f32 %v280_v40  ;;  %v209_v49 = vpop.f32.mrf.mxu0 }
 0x10a   :  { %v289_v50 = vpop.f32.mrf.mxu1  ;;  %v565_v51 = vpop.eup %564  ;;  %345 = vst.msk [vmem:[%s870_s3 + $0x20] sm:$0xff] %vm340_vm0, %v563_v47  ;;  %590 = vtanh.f32 %v215_v45  ;;  %v210_v52 = vadd.f32 %v705_v48, %v209_v49 }
 0x10b   :  { %v290_v53 = vadd.f32 %v705_v48, %v289_v50  ;;  %v567_v54 = vpop.eup %566  ;;  %361 = vst.msk [vmem:[%s870_s3 + $0xa0] sm:$0xff] %vm340_vm0, %v565_v51  ;;  %592 = vtanh.f32 %v295_v46  ;;  %v482_v55 = vpop.f32.mrf.mxu0 }
 0x10c   :  { %v506_v56 = vpop.f32.mrf.mxu1  ;;  %v569_v57 = vpop.eup %568  ;;  %348 = vst.msk [vmem:[%s870_s3 + $0x38] sm:$0xff] %vm340_vm0, %v567_v54  ;;  %594 = vtanh.f32 %v210_v52  ;;  %v225_v58 = vadd.f32 %v482_v55, %v705_v48 }
 0x10d   :  { %v305_v59 = vadd.f32 %v506_v56, %v705_v48  ;;  %v571_v60 = vpop.eup %570  ;;  %364 = vst.msk [vmem:[%s870_s3 + $0xb8] sm:$0xff] %vm340_vm0, %v569_v57  ;;  %596 = vtanh.f32 %v290_v53  ;;  %v219_v61 = vpop.f32.mrf.mxu0 }
 0x10e   :  { %v299_v62 = vpop.f32.mrf.mxu1  ;;  %v573_v63 = vpop.eup %572  ;;  %347 = vst.msk [vmem:[%s870_s3 + $0x30] sm:$0xff] %vm340_vm0, %v571_v60  ;;  %598 = vtanh.f32 %v225_v58  ;;  %v220_v0 = vadd.f32 %v705_v48, %v219_v61 }
 0x10f   :  { %v300_v1 = vadd.f32 %v705_v48, %v299_v62  ;;  %v575_v2 = vpop.eup %574  ;;  %363 = vst.msk [vmem:[%s870_s3 + $0xb0] sm:$0xff] %vm340_vm0, %v573_v63  ;;  %600 = vtanh.f32 %v305_v59 }
 0x110   :  { %v577_v3 = vpop.eup %576  ;;  %350 = vst.msk [vmem:[%s870_s3 + $0x48] sm:$0xff] %vm340_vm0, %v575_v2  ;;  %602 = vtanh.f32 %v220_v0 }
 0x111   :  { %v579_v4 = vpop.eup %578  ;;  %366 = vst.msk [vmem:[%s870_s3 + $0xc8] sm:$0xff] %vm340_vm0, %v577_v3  ;;  %604 = vtanh.f32 %v300_v1 }
 0x112   :  { %v581_v48 = vpop.eup %580  ;;  %349 = vst.msk [vmem:[%s870_s3 + $0x40] sm:$0xff] %vm340_vm0, %v579_v4 }
 0x113   :  { %v583_v5 = vpop.eup %582  ;;  %365 = vst.msk [vmem:[%s870_s3 + $0xc0] sm:$0xff] %vm340_vm0, %v581_v48 }
 0x114   :  { %v585_v6 = vpop.eup %584  ;;  %352 = vst.msk [vmem:[%s870_s3 + $0x58] sm:$0xff] %vm340_vm0, %v583_v5 }
 0x115   :  { %v587_v7 = vpop.eup %586  ;;  %368 = vst.msk [vmem:[%s870_s3 + $0xd8] sm:$0xff] %vm340_vm0, %v585_v6 }
 0x116   :  { %v589_v8 = vpop.eup %588  ;;  %351 = vst.msk [vmem:[%s870_s3 + $0x50] sm:$0xff] %vm340_vm0, %v587_v7 }
 0x117   :  { %v591_v9 = vpop.eup %590  ;;  %367 = vst.msk [vmem:[%s870_s3 + $0xd0] sm:$0xff] %vm340_vm0, %v589_v8 }
 0x118   :  { %v593_v10 = vpop.eup %592  ;;  %354 = vst.msk [vmem:[%s870_s3 + $0x68] sm:$0xff] %vm340_vm0, %v591_v9 }
 0x119   :  { %v595_v11 = vpop.eup %594  ;;  %370 = vst.msk [vmem:[%s870_s3 + $0xe8] sm:$0xff] %vm340_vm0, %v593_v10 }
 0x11a   :  { %v597_v12 = vpop.eup %596  ;;  %353 = vst.msk [vmem:[%s870_s3 + $0x60] sm:$0xff] %vm340_vm0, %v595_v11 }
 0x11b   :  { %v599_v13 = vpop.eup %598  ;;  %369 = vst.msk [vmem:[%s870_s3 + $0xe0] sm:$0xff] %vm340_vm0, %v597_v12 }
 0x11c   :  { %v601_v14 = vpop.eup %600  ;;  %356 = vst.msk [vmem:[%s870_s3 + $0x78] sm:$0xff] %vm340_vm0, %v599_v13 }
 0x11d   :  { %v603_v15 = vpop.eup %602  ;;  %372 = vst.msk [vmem:[%s870_s3 + $0xf8] sm:$0xff] %vm340_vm0, %v601_v14 }
 0x11e   :  { %v605_v16 = vpop.eup %604  ;;  %355 = vst.msk [vmem:[%s870_s3 + $0x70] sm:$0xff] %vm340_vm0, %v603_v15 }
 0x11f   :  { %371 = vst.msk [vmem:[%s870_s3 + $0xf0] sm:$0xff] %vm340_vm0, %v605_v16 }
 0x120   :  { %377 = vsyncpa [#allocation3], 1 }

</bundles_post_ra>
